<compile_context>
chip_gen: v6e
topology: v6e:2x2x1
jax: 0.10.0
libtpu: 0.0.40
codegen_flags: <defaults>
</compile_context>

<pallas_src>
import jax
import jax.numpy as jnp
from jax.experimental import pallas as pl
from jax.experimental.pallas import tpu as pltpu

IN_DIM = 256
HID_DIM = 128
OUT_DIM = 64
OUT_PAD = 128  # lane-dense output width; columns [64:128] are zero padding


def _fused_triplet_kernel(a1, a2, a3, p1, p2, p3, n1, n2, n3,
                          w1_ref, b1_ref, w2_ref, b2_ref, o_ref):
    """grid=(3,) over modalities.

    w1_ref:[256,128] b1_ref:[1,128] w2_ref:[128,128] b2_ref:[1,128] are already
    the current modality's slabs (selected by BlockSpec).  o_ref:[n_pad,128].
    The 9 input refs are [B,256] full blocks resident across grid steps.
    """
    m = pl.program_id(0)
    batch = a1.shape[0]
    n_pad = o_ref.shape[0]            # 3*B rounded up to a multiple of 8
    pad = n_pad - 3 * batch           # Python int at trace time

    def run(a_ref, p_ref, n_ref):
        parts = [a_ref[...], p_ref[...], n_ref[...]]
        if pad > 0:
            parts.append(jnp.zeros((pad, IN_DIM), jnp.float32))
        x = jnp.concatenate(parts, axis=0)          # [n_pad, 256] f32 (VMEM)
        xb = x.astype(jnp.bfloat16)                 # bf16 operands for the MXU
        h = jnp.dot(xb, w1_ref[...], preferred_element_type=jnp.float32)
        h = jnp.maximum(h + b1_ref[...], 0.0)       # bias + ReLU in f32
        y = jnp.dot(h.astype(jnp.bfloat16), w2_ref[...],
                    preferred_element_type=jnp.float32)
        o_ref[...] = (y + b2_ref[...]).astype(o_ref.dtype)   # full-block store

    @pl.when(m == 0)
    def _():
        run(a1, p1, n1)

    @pl.when(m == 1)
    def _():
        run(a2, p2, n2)

    @pl.when(m == 2)
    def _():
        run(a3, p3, n3)


def init_params(key):
    """PyTorch-style uniform(-1/sqrt(fan_in), +1/sqrt(fan_in)) init.

    Weights are stored pre-transposed [in, out], stacked along a leading
    modality axis of size 3, layer 2 zero-padded from 64 to 128 output lanes.
    Matmul weights are bf16; biases stay f32."""
    k1, k2, k3, k4 = jax.random.split(key, 4)
    lim1 = 1.0 / (IN_DIM ** 0.5)
    lim2 = 1.0 / (HID_DIM ** 0.5)
    w1 = jax.random.uniform(k1, (3, IN_DIM, HID_DIM), jnp.float32, -lim1, lim1)
    b1 = jax.random.uniform(k2, (3, 1, HID_DIM), jnp.float32, -lim1, lim1)
    w2 = jax.random.uniform(k3, (3, HID_DIM, OUT_DIM), jnp.float32, -lim2, lim2)
    b2 = jax.random.uniform(k4, (3, 1, OUT_DIM), jnp.float32, -lim2, lim2)
    w2 = jnp.pad(w2, ((0, 0), (0, 0), (0, OUT_PAD - OUT_DIM)))
    b2 = jnp.pad(b2, ((0, 0), (0, 0), (0, OUT_PAD - OUT_DIM)))
    return (w1.astype(jnp.bfloat16), b1, w2.astype(jnp.bfloat16), b2)


def multimodal_triplet_forward(params,
                               anchor1, anchor2, anchor3,
                               positive1, positive2, positive3,
                               negative1, negative2, negative3):
    """Returns ((a1,a2,a3), (p1,p2,p3), (n1,n2,n3)), each output [B, 64]."""
    w1, b1, w2, b2 = params
    b = anchor1.shape[0]
    n_pad = ((3 * b + 7) // 8) * 8

    in_spec_x = pl.BlockSpec((b, IN_DIM), lambda m: (0, 0))
    out = pl.pallas_call(
        _fused_triplet_kernel,
        out_shape=jax.ShapeDtypeStruct((3, n_pad, OUT_PAD), jnp.float32),
        grid=(3,),
        in_specs=[in_spec_x] * 9 + [
            pl.BlockSpec((None, IN_DIM, HID_DIM), lambda m: (m, 0, 0)),
            pl.BlockSpec((None, 1, HID_DIM), lambda m: (m, 0, 0)),
            pl.BlockSpec((None, HID_DIM, OUT_PAD), lambda m: (m, 0, 0)),
            pl.BlockSpec((None, 1, OUT_PAD), lambda m: (m, 0, 0)),
        ],
        out_specs=pl.BlockSpec((None, n_pad, OUT_PAD), lambda m: (m, 0, 0)),
        compiler_params=pltpu.CompilerParams(
            dimension_semantics=("parallel",)),
    )(anchor1, anchor2, anchor3, positive1, positive2, positive3,
      negative1, negative2, negative3, w1, b1, w2, b2)

    # Rows per modality m: [0:B] anchor, [B:2B] positive, [2B:3B] negative.
    anchor_out = tuple(out[m, 0:b, :OUT_DIM] for m in range(3))
    positive_out = tuple(out[m, b:2 * b, :OUT_DIM] for m in range(3))
    negative_out = tuple(out[m, 2 * b:3 * b, :OUT_DIM] for m in range(3))
    return anchor_out, positive_out, negative_out


def _reference_mlp(x, w1_m, b1_m, w2_m, b2_m):
    """Same math in plain JAX: bf16 operands, f32 accumulation, unpadded."""
    h = jnp.dot(x.astype(jnp.bfloat16), w1_m,
                preferred_element_type=jnp.float32) + b1_m
    h = jnp.maximum(h, 0.0)
    y = jnp.dot(h.astype(jnp.bfloat16), w2_m,
                preferred_element_type=jnp.float32) + b2_m
    return y[:, :OUT_DIM]


if __name__ == "__main__":
    key = jax.random.PRNGKey(0)
    k_params, k_data = jax.random.split(key)
    params = init_params(k_params)

    B = 2
    data_keys = jax.random.split(k_data, 9)
    inputs = [jax.random.normal(k, (B, IN_DIM), jnp.float32) for k in data_keys]

    fwd = jax.jit(multimodal_triplet_forward)
    out = fwd(params, *inputs)
    out = jax.block_until_ready(out)

    # Correctness check against a plain-JAX reference of the same math.
    w1, b1, w2, b2 = params
    groups = (inputs[0:3], inputs[3:6], inputs[6:9])   # anchors, positives, negatives
    for g_idx, group in enumerate(groups):
        for m in range(3):
            ref = _reference_mlp(group[m], w1[m], b1[m], w2[m], b2[m])
            got = out[g_idx][m]
            assert got.shape == (B, OUT_DIM), got.shape
            assert jnp.allclose(got, ref, atol=1e-2, rtol=1e-2), (g_idx, m)

    print("KERNEL_OK")
</pallas_src>

<mosaic_0001>
module attributes {stable_mosaic.version = 11 : i64} {
  func.func @_fused_triplet_kernel(%arg0: i32, %arg1: memref<2x256xf32, #tpu.memory_space<vmem>>, %arg2: memref<2x256xf32, #tpu.memory_space<vmem>>, %arg3: memref<2x256xf32, #tpu.memory_space<vmem>>, %arg4: memref<2x256xf32, #tpu.memory_space<vmem>>, %arg5: memref<2x256xf32, #tpu.memory_space<vmem>>, %arg6: memref<2x256xf32, #tpu.memory_space<vmem>>, %arg7: memref<2x256xf32, #tpu.memory_space<vmem>>, %arg8: memref<2x256xf32, #tpu.memory_space<vmem>>, %arg9: memref<2x256xf32, #tpu.memory_space<vmem>>, %arg10: memref<1x256x128xbf16, #tpu.memory_space<vmem>>, %arg11: memref<1x1x128xf32, #tpu.memory_space<vmem>>, %arg12: memref<1x128x128xbf16, #tpu.memory_space<vmem>>, %arg13: memref<1x1x128xf32, #tpu.memory_space<vmem>>, %arg14: memref<1x8x128xf32, #tpu.memory_space<vmem>>) attributes {dimension_semantics = [#tpu.dimension_semantics<parallel>], iteration_bounds = array<i64: 3>, scalar_prefetch = 0 : i64, scratch_operands = 0 : i64, tpu.core_type = #tpu.core_type<tc>, window_params = [{pipeline_mode = #tpu.pipeline_mode<synchronous>, transform_indices = @transform_0, window_bounds = array<i64: 2, 256>}, {pipeline_mode = #tpu.pipeline_mode<synchronous>, transform_indices = @transform_1, window_bounds = array<i64: 2, 256>}, {pipeline_mode = #tpu.pipeline_mode<synchronous>, transform_indices = @transform_2, window_bounds = array<i64: 2, 256>}, {pipeline_mode = #tpu.pipeline_mode<synchronous>, transform_indices = @transform_3, window_bounds = array<i64: 2, 256>}, {pipeline_mode = #tpu.pipeline_mode<synchronous>, transform_indices = @transform_4, window_bounds = array<i64: 2, 256>}, {pipeline_mode = #tpu.pipeline_mode<synchronous>, transform_indices = @transform_5, window_bounds = array<i64: 2, 256>}, {pipeline_mode = #tpu.pipeline_mode<synchronous>, transform_indices = @transform_6, window_bounds = array<i64: 2, 256>}, {pipeline_mode = #tpu.pipeline_mode<synchronous>, transform_indices = @transform_7, window_bounds = array<i64: 2, 256>}, {pipeline_mode = #tpu.pipeline_mode<synchronous>, transform_indices = @transform_8, window_bounds = array<i64: 2, 256>}, {transform_indices = @transform_9, window_bounds = array<i64: 1, 256, 128>}, {transform_indices = @transform_10, window_bounds = array<i64: 1, 1, 128>}, {transform_indices = @transform_11, window_bounds = array<i64: 1, 128, 128>}, {transform_indices = @transform_12, window_bounds = array<i64: 1, 1, 128>}, {transform_indices = @transform_13, window_bounds = array<i64: 1, 8, 128>}]} {
    %c0_i32 = arith.constant 0 : i32
    %0 = arith.cmpi eq, %arg0, %c0_i32 : i32
    %1 = arith.extui %0 : i1 to i32
    %c0_i32_0 = arith.constant 0 : i32
    %2 = arith.cmpi ne, %1, %c0_i32_0 : i32
    scf.if %2 {
      %c0 = arith.constant 0 : index
      %c0_3 = arith.constant 0 : index
      %9 = vector.load %arg1[%c0, %c0_3] : memref<2x256xf32, #tpu.memory_space<vmem>>, vector<2x256xf32>
      %c0_4 = arith.constant 0 : index
      %c0_5 = arith.constant 0 : index
      %10 = vector.load %arg4[%c0_4, %c0_5] : memref<2x256xf32, #tpu.memory_space<vmem>>, vector<2x256xf32>
      %c0_6 = arith.constant 0 : index
      %c0_7 = arith.constant 0 : index
      %11 = vector.load %arg7[%c0_6, %c0_7] : memref<2x256xf32, #tpu.memory_space<vmem>>, vector<2x256xf32>
      %cst = arith.constant 0.000000e+00 : f32
      %12 = vector.broadcast %cst : f32 to vector<2x256xf32>
      %13 = tpu.concatenate %9, %10, %11, %12 in 0 : vector<2x256xf32>, vector<2x256xf32>, vector<2x256xf32>, vector<2x256xf32> -> vector<8x256xf32>
      %14 = arith.truncf %13 : vector<8x256xf32> to vector<8x256xbf16>
      %c0_8 = arith.constant 0 : index
      %c0_9 = arith.constant 0 : index
      %c0_10 = arith.constant 0 : index
      %15 = vector.load %arg10[%c0_8, %c0_9, %c0_10] : memref<1x256x128xbf16, #tpu.memory_space<vmem>>, vector<1x256x128xbf16>
      %16 = vector.shape_cast %15 : vector<1x256x128xbf16> to vector<256x128xbf16>
      %cst_11 = arith.constant dense<0.000000e+00> : vector<8x128xf32>
      %17 = tpu.matmul %14, %16, %cst_11 {dimension_numbers = #tpu.dot_dimension_numbers<[1], [0], [0], [1], [0, 0, 1, 1], [], []>} : vector<8x256xbf16>, vector<256x128xbf16>, vector<8x128xf32> -> vector<8x128xf32>
      %c0_12 = arith.constant 0 : index
      %c0_13 = arith.constant 0 : index
      %c0_14 = arith.constant 0 : index
      %18 = vector.load %arg11[%c0_12, %c0_13, %c0_14] : memref<1x1x128xf32, #tpu.memory_space<vmem>>, vector<1x1x128xf32>
      %19 = vector.shape_cast %18 : vector<1x1x128xf32> to vector<1x128xf32>
      %20 = vector.broadcast %19 : vector<1x128xf32> to vector<8x128xf32>
      %21 = arith.addf %17, %20 : vector<8x128xf32>
      %cst_15 = arith.constant 0.000000e+00 : f32
      %22 = vector.broadcast %cst_15 : f32 to vector<8x128xf32>
      %23 = arith.maximumf %21, %22 : vector<8x128xf32>
      %24 = arith.truncf %23 : vector<8x128xf32> to vector<8x128xbf16>
      %c0_16 = arith.constant 0 : index
      %c0_17 = arith.constant 0 : index
      %c0_18 = arith.constant 0 : index
      %25 = vector.load %arg12[%c0_16, %c0_17, %c0_18] : memref<1x128x128xbf16, #tpu.memory_space<vmem>>, vector<1x128x128xbf16>
      %26 = vector.shape_cast %25 : vector<1x128x128xbf16> to vector<128x128xbf16>
      %cst_19 = arith.constant dense<0.000000e+00> : vector<8x128xf32>
      %27 = tpu.matmul %24, %26, %cst_19 {dimension_numbers = #tpu.dot_dimension_numbers<[1], [0], [0], [1], [0, 0, 1, 1], [], []>} : vector<8x128xbf16>, vector<128x128xbf16>, vector<8x128xf32> -> vector<8x128xf32>
      %c0_20 = arith.constant 0 : index
      %c0_21 = arith.constant 0 : index
      %c0_22 = arith.constant 0 : index
      %28 = vector.load %arg13[%c0_20, %c0_21, %c0_22] : memref<1x1x128xf32, #tpu.memory_space<vmem>>, vector<1x1x128xf32>
      %29 = vector.shape_cast %28 : vector<1x1x128xf32> to vector<1x128xf32>
      %30 = vector.broadcast %29 : vector<1x128xf32> to vector<8x128xf32>
      %31 = arith.addf %27, %30 : vector<8x128xf32>
      %c0_23 = arith.constant 0 : index
      %c0_24 = arith.constant 0 : index
      %c0_25 = arith.constant 0 : index
      %32 = vector.load %arg14[%c0_23, %c0_24, %c0_25] : memref<1x8x128xf32, #tpu.memory_space<vmem>>, vector<1x8x128xf32>
      %33 = vector.shape_cast %32 : vector<1x8x128xf32> to vector<8x128xf32>
      %34 = vector.shape_cast %31 : vector<8x128xf32> to vector<1x8x128xf32>
      tpu.vector_store %arg14[%c0_23, %c0_24, %c0_25], %34 {strides = array<i32>} : memref<1x8x128xf32, #tpu.memory_space<vmem>>, vector<1x8x128xf32>,
    } else {
    }
    %c1_i32 = arith.constant 1 : i32
    %3 = arith.cmpi eq, %arg0, %c1_i32 : i32
    %4 = arith.extui %3 : i1 to i32
    %c0_i32_1 = arith.constant 0 : i32
    %5 = arith.cmpi ne, %4, %c0_i32_1 : i32
    scf.if %5 {
      %c0 = arith.constant 0 : index
      %c0_3 = arith.constant 0 : index
      %9 = vector.load %arg2[%c0, %c0_3] : memref<2x256xf32, #tpu.memory_space<vmem>>, vector<2x256xf32>
      %c0_4 = arith.constant 0 : index
      %c0_5 = arith.constant 0 : index
      %10 = vector.load %arg5[%c0_4, %c0_5] : memref<2x256xf32, #tpu.memory_space<vmem>>, vector<2x256xf32>
      %c0_6 = arith.constant 0 : index
      %c0_7 = arith.constant 0 : index
      %11 = vector.load %arg8[%c0_6, %c0_7] : memref<2x256xf32, #tpu.memory_space<vmem>>, vector<2x256xf32>
      %cst = arith.constant 0.000000e+00 : f32
      %12 = vector.broadcast %cst : f32 to vector<2x256xf32>
      %13 = tpu.concatenate %9, %10, %11, %12 in 0 : vector<2x256xf32>, vector<2x256xf32>, vector<2x256xf32>, vector<2x256xf32> -> vector<8x256xf32>
      %14 = arith.truncf %13 : vector<8x256xf32> to vector<8x256xbf16>
      %c0_8 = arith.constant 0 : index
      %c0_9 = arith.constant 0 : index
      %c0_10 = arith.constant 0 : index
      %15 = vector.load %arg10[%c0_8, %c0_9, %c0_10] : memref<1x256x128xbf16, #tpu.memory_space<vmem>>, vector<1x256x128xbf16>
      %16 = vector.shape_cast %15 : vector<1x256x128xbf16> to vector<256x128xbf16>
      %cst_11 = arith.constant dense<0.000000e+00> : vector<8x128xf32>
      %17 = tpu.matmul %14, %16, %cst_11 {dimension_numbers = #tpu.dot_dimension_numbers<[1], [0], [0], [1], [0, 0, 1, 1], [], []>} : vector<8x256xbf16>, vector<256x128xbf16>, vector<8x128xf32> -> vector<8x128xf32>
      %c0_12 = arith.constant 0 : index
      %c0_13 = arith.constant 0 : index
      %c0_14 = arith.constant 0 : index
      %18 = vector.load %arg11[%c0_12, %c0_13, %c0_14] : memref<1x1x128xf32, #tpu.memory_space<vmem>>, vector<1x1x128xf32>
      %19 = vector.shape_cast %18 : vector<1x1x128xf32> to vector<1x128xf32>
      %20 = vector.broadcast %19 : vector<1x128xf32> to vector<8x128xf32>
      %21 = arith.addf %17, %20 : vector<8x128xf32>
      %cst_15 = arith.constant 0.000000e+00 : f32
      %22 = vector.broadcast %cst_15 : f32 to vector<8x128xf32>
      %23 = arith.maximumf %21, %22 : vector<8x128xf32>
      %24 = arith.truncf %23 : vector<8x128xf32> to vector<8x128xbf16>
      %c0_16 = arith.constant 0 : index
      %c0_17 = arith.constant 0 : index
      %c0_18 = arith.constant 0 : index
      %25 = vector.load %arg12[%c0_16, %c0_17, %c0_18] : memref<1x128x128xbf16, #tpu.memory_space<vmem>>, vector<1x128x128xbf16>
      %26 = vector.shape_cast %25 : vector<1x128x128xbf16> to vector<128x128xbf16>
      %cst_19 = arith.constant dense<0.000000e+00> : vector<8x128xf32>
      %27 = tpu.matmul %24, %26, %cst_19 {dimension_numbers = #tpu.dot_dimension_numbers<[1], [0], [0], [1], [0, 0, 1, 1], [], []>} : vector<8x128xbf16>, vector<128x128xbf16>, vector<8x128xf32> -> vector<8x128xf32>
      %c0_20 = arith.constant 0 : index
      %c0_21 = arith.constant 0 : index
      %c0_22 = arith.constant 0 : index
      %28 = vector.load %arg13[%c0_20, %c0_21, %c0_22] : memref<1x1x128xf32, #tpu.memory_space<vmem>>, vector<1x1x128xf32>
      %29 = vector.shape_cast %28 : vector<1x1x128xf32> to vector<1x128xf32>
      %30 = vector.broadcast %29 : vector<1x128xf32> to vector<8x128xf32>
      %31 = arith.addf %27, %30 : vector<8x128xf32>
      %c0_23 = arith.constant 0 : index
      %c0_24 = arith.constant 0 : index
      %c0_25 = arith.constant 0 : index
      %32 = vector.load %arg14[%c0_23, %c0_24, %c0_25] : memref<1x8x128xf32, #tpu.memory_space<vmem>>, vector<1x8x128xf32>
      %33 = vector.shape_cast %32 : vector<1x8x128xf32> to vector<8x128xf32>
      %34 = vector.shape_cast %31 : vector<8x128xf32> to vector<1x8x128xf32>
      tpu.vector_store %arg14[%c0_23, %c0_24, %c0_25], %34 {strides = array<i32>} : memref<1x8x128xf32, #tpu.memory_space<vmem>>, vector<1x8x128xf32>,
    } else {
    }
    %c2_i32 = arith.constant 2 : i32
    %6 = arith.cmpi eq, %arg0, %c2_i32 : i32
    %7 = arith.extui %6 : i1 to i32
    %c0_i32_2 = arith.constant 0 : i32
    %8 = arith.cmpi ne, %7, %c0_i32_2 : i32
    scf.if %8 {
      %c0 = arith.constant 0 : index
      %c0_3 = arith.constant 0 : index
      %9 = vector.load %arg3[%c0, %c0_3] : memref<2x256xf32, #tpu.memory_space<vmem>>, vector<2x256xf32>
      %c0_4 = arith.constant 0 : index
      %c0_5 = arith.constant 0 : index
      %10 = vector.load %arg6[%c0_4, %c0_5] : memref<2x256xf32, #tpu.memory_space<vmem>>, vector<2x256xf32>
      %c0_6 = arith.constant 0 : index
      %c0_7 = arith.constant 0 : index
      %11 = vector.load %arg9[%c0_6, %c0_7] : memref<2x256xf32, #tpu.memory_space<vmem>>, vector<2x256xf32>
      %cst = arith.constant 0.000000e+00 : f32
      %12 = vector.broadcast %cst : f32 to vector<2x256xf32>
      %13 = tpu.concatenate %9, %10, %11, %12 in 0 : vector<2x256xf32>, vector<2x256xf32>, vector<2x256xf32>, vector<2x256xf32> -> vector<8x256xf32>
      %14 = arith.truncf %13 : vector<8x256xf32> to vector<8x256xbf16>
      %c0_8 = arith.constant 0 : index
      %c0_9 = arith.constant 0 : index
      %c0_10 = arith.constant 0 : index
      %15 = vector.load %arg10[%c0_8, %c0_9, %c0_10] : memref<1x256x128xbf16, #tpu.memory_space<vmem>>, vector<1x256x128xbf16>
      %16 = vector.shape_cast %15 : vector<1x256x128xbf16> to vector<256x128xbf16>
      %cst_11 = arith.constant dense<0.000000e+00> : vector<8x128xf32>
      %17 = tpu.matmul %14, %16, %cst_11 {dimension_numbers = #tpu.dot_dimension_numbers<[1], [0], [0], [1], [0, 0, 1, 1], [], []>} : vector<8x256xbf16>, vector<256x128xbf16>, vector<8x128xf32> -> vector<8x128xf32>
      %c0_12 = arith.constant 0 : index
      %c0_13 = arith.constant 0 : index
      %c0_14 = arith.constant 0 : index
      %18 = vector.load %arg11[%c0_12, %c0_13, %c0_14] : memref<1x1x128xf32, #tpu.memory_space<vmem>>, vector<1x1x128xf32>
      %19 = vector.shape_cast %18 : vector<1x1x128xf32> to vector<1x128xf32>
      %20 = vector.broadcast %19 : vector<1x128xf32> to vector<8x128xf32>
      %21 = arith.addf %17, %20 : vector<8x128xf32>
      %cst_15 = arith.constant 0.000000e+00 : f32
      %22 = vector.broadcast %cst_15 : f32 to vector<8x128xf32>
      %23 = arith.maximumf %21, %22 : vector<8x128xf32>
      %24 = arith.truncf %23 : vector<8x128xf32> to vector<8x128xbf16>
      %c0_16 = arith.constant 0 : index
      %c0_17 = arith.constant 0 : index
      %c0_18 = arith.constant 0 : index
      %25 = vector.load %arg12[%c0_16, %c0_17, %c0_18] : memref<1x128x128xbf16, #tpu.memory_space<vmem>>, vector<1x128x128xbf16>
      %26 = vector.shape_cast %25 : vector<1x128x128xbf16> to vector<128x128xbf16>
      %cst_19 = arith.constant dense<0.000000e+00> : vector<8x128xf32>
      %27 = tpu.matmul %24, %26, %cst_19 {dimension_numbers = #tpu.dot_dimension_numbers<[1], [0], [0], [1], [0, 0, 1, 1], [], []>} : vector<8x128xbf16>, vector<128x128xbf16>, vector<8x128xf32> -> vector<8x128xf32>
      %c0_20 = arith.constant 0 : index
      %c0_21 = arith.constant 0 : index
      %c0_22 = arith.constant 0 : index
      %28 = vector.load %arg13[%c0_20, %c0_21, %c0_22] : memref<1x1x128xf32, #tpu.memory_space<vmem>>, vector<1x1x128xf32>
      %29 = vector.shape_cast %28 : vector<1x1x128xf32> to vector<1x128xf32>
      %30 = vector.broadcast %29 : vector<1x128xf32> to vector<8x128xf32>
      %31 = arith.addf %27, %30 : vector<8x128xf32>
      %c0_23 = arith.constant 0 : index
      %c0_24 = arith.constant 0 : index
      %c0_25 = arith.constant 0 : index
      %32 = vector.load %arg14[%c0_23, %c0_24, %c0_25] : memref<1x8x128xf32, #tpu.memory_space<vmem>>, vector<1x8x128xf32>
      %33 = vector.shape_cast %32 : vector<1x8x128xf32> to vector<8x128xf32>
      %34 = vector.shape_cast %31 : vector<8x128xf32> to vector<1x8x128xf32>
      tpu.vector_store %arg14[%c0_23, %c0_24, %c0_25], %34 {strides = array<i32>} : memref<1x8x128xf32, #tpu.memory_space<vmem>>, vector<1x8x128xf32>,
    } else {
    }
    return
  }
  func.func @transform_0(%arg0: i32) -> (i32, i32) {
    %c0_i32 = arith.constant 0 : i32
    %c0_i32_0 = arith.constant 0 : i32
    %c0_i32_1 = arith.constant 0 : i32
    return %c0_i32, %c0_i32_0 : i32, i32
  }
  func.func @transform_1(%arg0: i32) -> (i32, i32) {
    %c0_i32 = arith.constant 0 : i32
    %c0_i32_0 = arith.constant 0 : i32
    %c0_i32_1 = arith.constant 0 : i32
    return %c0_i32, %c0_i32_0 : i32, i32
  }
  func.func @transform_2(%arg0: i32) -> (i32, i32) {
    %c0_i32 = arith.constant 0 : i32
    %c0_i32_0 = arith.constant 0 : i32
    %c0_i32_1 = arith.constant 0 : i32
    return %c0_i32, %c0_i32_0 : i32, i32
  }
  func.func @transform_3(%arg0: i32) -> (i32, i32) {
    %c0_i32 = arith.constant 0 : i32
    %c0_i32_0 = arith.constant 0 : i32
    %c0_i32_1 = arith.constant 0 : i32
    return %c0_i32, %c0_i32_0 : i32, i32
  }
  func.func @transform_4(%arg0: i32) -> (i32, i32) {
    %c0_i32 = arith.constant 0 : i32
    %c0_i32_0 = arith.constant 0 : i32
    %c0_i32_1 = arith.constant 0 : i32
    return %c0_i32, %c0_i32_0 : i32, i32
  }
  func.func @transform_5(%arg0: i32) -> (i32, i32) {
    %c0_i32 = arith.constant 0 : i32
    %c0_i32_0 = arith.constant 0 : i32
    %c0_i32_1 = arith.constant 0 : i32
    return %c0_i32, %c0_i32_0 : i32, i32
  }
  func.func @transform_6(%arg0: i32) -> (i32, i32) {
    %c0_i32 = arith.constant 0 : i32
    %c0_i32_0 = arith.constant 0 : i32
    %c0_i32_1 = arith.constant 0 : i32
    return %c0_i32, %c0_i32_0 : i32, i32
  }
  func.func @transform_7(%arg0: i32) -> (i32, i32) {
    %c0_i32 = arith.constant 0 : i32
    %c0_i32_0 = arith.constant 0 : i32
    %c0_i32_1 = arith.constant 0 : i32
    return %c0_i32, %c0_i32_0 : i32, i32
  }
  func.func @transform_8(%arg0: i32) -> (i32, i32) {
    %c0_i32 = arith.constant 0 : i32
    %c0_i32_0 = arith.constant 0 : i32
    %c0_i32_1 = arith.constant 0 : i32
    return %c0_i32, %c0_i32_0 : i32, i32
  }
  func.func @transform_9(%arg0: i32) -> (i32, i32, i32) {
    %c0_i32 = arith.constant 0 : i32
    %c0_i32_0 = arith.constant 0 : i32
    %c0_i32_1 = arith.constant 0 : i32
    return %arg0, %c0_i32, %c0_i32_0 : i32, i32, i32
  }
  func.func @transform_10(%arg0: i32) -> (i32, i32, i32) {
    %c0_i32 = arith.constant 0 : i32
    %c0_i32_0 = arith.constant 0 : i32
    %c0_i32_1 = arith.constant 0 : i32
    return %arg0, %c0_i32, %c0_i32_0 : i32, i32, i32
  }
  func.func @transform_11(%arg0: i32) -> (i32, i32, i32) {
    %c0_i32 = arith.constant 0 : i32
    %c0_i32_0 = arith.constant 0 : i32
    %c0_i32_1 = arith.constant 0 : i32
    return %arg0, %c0_i32, %c0_i32_0 : i32, i32, i32
  }
  func.func @transform_12(%arg0: i32) -> (i32, i32, i32) {
    %c0_i32 = arith.constant 0 : i32
    %c0_i32_0 = arith.constant 0 : i32
    %c0_i32_1 = arith.constant 0 : i32
    return %arg0, %c0_i32, %c0_i32_0 : i32, i32, i32
  }
  func.func @transform_13(%arg0: i32) -> (i32, i32, i32) {
    %c0_i32 = arith.constant 0 : i32
    %c0_i32_0 = arith.constant 0 : i32
    %c0_i32_1 = arith.constant 0 : i32
    return %arg0, %c0_i32, %c0_i32_0 : i32, i32, i32
  }
}

</mosaic_0001>

<bundles_post_ra>
// kernel: multimodal_triplet_forward.1
= control target key start
LH: loop header
LB: loop body
LE: loop exit
PB: predicated region body
PF: predicated region fallthrough
CT: control target
= control target key end

     0   :  { %s3001_s0 = inlined_call_operand.vmem [shape: f32[2,256], index: 0, kind: input, shape index: {}]   ;;  %s3002_s1 = inlined_call_operand.vmem [shape: f32[2,256], index: 1, kind: input, shape index: {}]   ;;  %s3003_s2 = inlined_call_operand.hbm [shape: f32[2,256], index: 2, kind: input, shape index: {}]   ;;  %s3004_s3 = inlined_call_operand.vmem [shape: f32[2,256], index: 3, kind: input, shape index: {}]   ;;  %s3005_s4 = inlined_call_operand.hbm [shape: f32[2,256], index: 4, kind: input, shape index: {}]   ;;  %s3006_s5 = inlined_call_operand.vmem [shape: f32[2,256], index: 5, kind: input, shape index: {}]   ;;  %s3007_s6 = inlined_call_operand.hbm [shape: f32[2,256], index: 6, kind: input, shape index: {}]   ;;  %s3008_s7 = inlined_call_operand.vmem [shape: f32[2,256], index: 7, kind: input, shape index: {}]   ;;  %s3009_s8 = inlined_call_operand.hbm [shape: f32[2,256], index: 8, kind: input, shape index: {}]   ;;  %s3010_s9 = inlined_call_operand.hbm [shape: bf16[3,256,128], index: 9, kind: input, shape index: {}]   ;;  %s3011_s10 = inlined_call_operand.hbm [shape: f32[3,1,128], index: 10, kind: input, shape index: {}]   ;;  %s3012_s11 = inlined_call_operand.hbm [shape: bf16[3,128,128], index: 11, kind: input, shape index: {}]   ;;  %s3013_s12 = inlined_call_operand.hbm [shape: f32[3,1,128], index: 12, kind: input, shape index: {}]   ;;  %s3014_s13 = inlined_call_operand.vmem [shape: f32[3,8,128], index: 13, kind: output, shape index: {}]  }
   0x1   :  { %3028 = sst [smem:[#allocation20_spill]] %s3001_s0 }
   0x2   :  { %3029 = sst [smem:[#allocation21_spill]] %s3002_s1 }
   0x3   :  { %3030 = sst [smem:[#allocation22_spill]] %s3003_s2 }
   0x4   :  { %3031 = sst [smem:[#allocation23_spill]] %s3004_s3 }
   0x5   :  { %3032 = sst [smem:[#allocation24_spill]] %s3006_s5 }
   0x6   :  { %3033 = sst [smem:[#allocation25_spill]] %s3008_s7 }
   0x7   :  { %3034 = sst [smem:[#allocation26_spill]] %s3010_s9 }
   0x8   :  { %3035 = sst [smem:[#allocation27_spill]] %s3014_s13 }
   0x9   :  { %18 = vsyncpa [#allocation3], 0 }
   0xa   :  { %19 = vsyncpa [#allocation5], 0 }
   0xb   :  { %20 = vsyncpa [#allocation8], 0  ;;  %s2606_s25 = smov 0   ;;  %s2608_s26 = smov 0  }
   0xc   :  { %s2610_s27 = smov 0   ;;  %s2612_s28 = smov 0  }
   0xd LB: > { %3036 = sst [smem:[#allocation17_spill]] %s2511_s27  ;;  %s2625_s29 = sadd.s32 4294967295, %s2515_s28   ;;  %s2515_s28 = sphi %s2612_s28, %s3069_s28   ;;  %s2511_s27 = sphi %s2610_s27, %s3071_s27   ;;  %s2507_s26 = sphi %s2608_s26, %s3073_s26   ;;  %s2503_s25 = sphi %s2606_s25, %s3072_s25  }
   0xe   : > { %s2628_s30 = sadd.s32 1, %s2515_s28   ;;  %s222_s15 = sadd.s32 1, %s2511_s27 }
   0xf   : > { %3037 = sst [smem:[#allocation18_spill]] %s2628_s30  ;;  %s219_s14 = ssub.s32 %s2515_s28, %s2628_s30 }
  0x10   : > { %p220_p0 = scmp.eq.s32.totalorder %s219_s14, 0  ;;  %p229_p1 = scmp.ne.s32.totalorder %s2511_s27, %s2507_s26 }
  0x11   : > { %p230_p2 = scmp.eq.s32.totalorder %s2515_s28, 0  ;;  %p235_p3 = scmp.ne.s32.totalorder %s2507_s26, %s2503_s25 }
  0x12   : > { %s2638_s16 = scalar_select %p220_p0, %s2511_s27, %s222_s15  }
  0x13   : > { %p2640_p4 = por %p230_p2, %p229_p1  ;;  %p3018_p5 = scmp.eq.s32.totalorder %s2625_s29, 0 }
  0x14   : > { %3038 = sst [smem:[#allocation19_spill]] %s2638_s16  ;;  %p1788_p6 = scmp.ge.s32.totalorder %s2515_s28, 1 }
  0x15   : > { %p350_p7 = scmp.lt.s32.totalorder %s2515_s28, 4  ;;  %p2649_p8 = por %p3018_p5, %p235_p3 }
  0x16   : > { %s2517_s20 = smov [#allocation2]   ;;  %p2126_p12 = scmp.lt.s32.totalorder %s2515_s28, 3 }
  0x17   : > { %s3040_s18 = scalar_select %p2649_p8, 1, 0 }
  0x18   : > { %p2654_p10 = pnand %p1788_p6, %p350_p7  ;;  %s369_s21 = sshll.u32 %s2517_s20, 4  ;;  %s370_s21 = int_to_ptr.vmem [resolvable:$true] %s369_s21 }
  0x19   : > { %s422_s22 = sand.u32 1, %s2515_s28   ;;  %s2669_s24 = sand.u32 1, %s2511_s27  }
  0x1a   : > { %s3041_s19 = scalar_select %p2654_p10, 1, 0 }
  0x1b   : > { %p2096_p11 = pneg %p2654_p10  ;;  %s1917_s25 = sshll.u32 %s2515_s28, 11 }
  0x1c   : > { %s1794_s14 = sshll.u32 %s2669_s24, 7  ;;  %s2264_s15 = scalar_lea.vmem %s370_s21, 64 }
  0x1d   : > { %p2664_p13 = pnand %p2096_p11, %p3018_p5  ;;  %p2265_p1 = scmp.ne.s32.totalorder %s370_s21, %s2264_s15 }
  0x1e   : > { %p2272_p6 = scmp.lt.s32.totalorder %s370_s21, %s370_s21  ;;  %p2273_p7 = scmp.lt.s32.totalorder %s2264_s15, %s2264_s15 }
  0x1f   : > { %s3042_s23 = scalar_select %p2664_p13, 1, 0 }
  0x20   : > { %p3019_p0 = pneg %p2664_p13  ;;  %p2274_p11 = por %p2273_p7, %p2272_p6 }
  0x22   : > { %p2267_p2 = pnand %p2265_p1, %p3019_p0 }
  0x24   : > { %p2268_p3 = pneg %p2267_p2 }
  0x26   : > { %p2275_p9 = pnand %p2274_p11, %p2268_p3 }
  0x28   : > { %2278 = shalt.err (!%p2275_p9)
}
  0x29   : > { %s3043_s2 = sld [smem:[#allocation22_spill]]  ;;  %s426_s15 = scalar_lea.vmem [#allocation9], %s1794_s14 }
  0x2a   : > { %s3044_s9 = sld [smem:[#allocation26_spill]]  ;;  %s433_s1 = sshll.u32 %s426_s15, 4  ;;  %s2696_s1 = int_to_ptr.vmem [resolvable:$true] %s433_s1 }
  0x2b   : > { %p2692_p9 = pnand %p2126_p12, %p2640_p4  ;;  %s2698_s16 = scalar_lea.sflag [#allocation3], %s422_s22 }
  0x2d   : > { %s3045_s7 = scalar_select %p2692_p9, 1, 0 }
  0x2e   : > { %p2704_p2 = pneg %p2692_p9 }
  0x2f   : > { %2099 = dma.hbm_to_vmem [thread:$0]  (!%p2664_p13), %s3043_s2, 64, %s370_s21, [#allocation3]  }
  0x30   : > { %s2686_s5 = scalar_lea.hbm %s3044_s9, %s1917_s25  ;;  %s2284_s25 = scalar_lea.hbm %s3044_s9, 6144 }
  0x31   : > { %s2279_s21 = scalar_lea.hbm %s2686_s5, 2048  ;;  %p2285_p4 = scmp.lt.s32.totalorder %s2686_s5, %s3044_s9 }
  0x32   : > { %p2280_p1 = scmp.ne.s32.totalorder %s2686_s5, %s2279_s21  ;;  %p2286_p12 = scmp.lt.s32.totalorder %s2284_s25, %s2279_s21 }
  0x33   : > { %s3046_s27 = scalar_select %p2704_p2, 1, 0 }
  0x34   : > { %p2282_p3 = pnand %p2704_p2, %p2280_p1  ;;  %p2287_p7 = por %p2286_p12, %p2285_p4 }
  0x36   : > { %p2283_p6 = pneg %p2282_p3 }
  0x38   : > { %p2288_p11 = pnand %p2287_p7, %p2283_p6 }
  0x3a   : > { %2291 = shalt.err (!%p2288_p11)
}
  0x3b   : > { %s2292_s22 = scalar_lea.vmem %s2696_s1, 2048  ;;  %s2518_s15 = smov [#allocation9]  }
  0x3c   : > { %p2293_p5 = scmp.ne.s32.totalorder %s2696_s1, %s2292_s22  ;;  %s2297_s30 = sshll.u32 %s2518_s15, 4  ;;  %s2298_s30 = int_to_ptr.vmem [resolvable:$false] %s2297_s30 }
  0x3d   : > { %s2299_s17 = scalar_lea.vmem %s2298_s30, 4096  ;;  %p2300_p0 = scmp.lt.s32.totalorder %s2696_s1, %s2298_s30 }
  0x3e   : > { %p2295_p1 = pnand %p2293_p5, %p2704_p2  ;;  %p2301_p8 = scmp.lt.s32.totalorder %s2299_s17, %s2292_s22 }
  0x40   : > { %p2296_p3 = pneg %p2295_p1  ;;  %p2302_p10 = por %p2301_p8, %p2300_p0 }
  0x42   : > { %p2303_p13 = pnand %p2302_p10, %p2296_p3 }
  0x44   : > { %2306 = shalt.err (!%p2303_p13)
}
  0x45   : > { %s2519_s21 = smov 64   ;;  %s2520_s25 = smov 4  }
  0x46   : > { %2112 = dma.hbm_to_vmem [thread:$0]  (!%p2692_p9), %s2686_s5, 2048, %s2696_s1, %s2698_s16, %s2519_s21, %s2519_s21, %s2520_s25  }
  0x47   : > { %s1797_s14 = sshll.u32 %s2515_s28, 4  ;;  %s446_s30 = scalar_lea.vmem [#allocation10], %s2669_s24 }
  0x48   : > { %s451_s15 = scalar_lea.hbm %s3011_s10, %s1797_s14  ;;  %s453_s17 = sshll.u32 %s446_s30, 4  ;;  %s454_s17 = int_to_ptr.vmem [resolvable:$true] %s453_s17 }
  0x49   : > { %s2307_s2 = scalar_lea.hbm %s451_s15, 16  ;;  %s2312_s0 = scalar_lea.hbm %s3011_s10, 48 }
  0x4a   : > { %p2308_p5 = scmp.ne.s32.totalorder %s451_s15, %s2307_s2  ;;  %p2313_p13 = scmp.lt.s32.totalorder %s451_s15, %s3011_s10 }
  0x4b   : > { %p2314_p0 = scmp.lt.s32.totalorder %s2312_s0, %s2307_s2 }
  0x4c   : > { %p2310_p8 = pnand %p2308_p5, %p2704_p2 }
  0x4d   : > { %p2315_p6 = por %p2314_p0, %p2313_p13 }
  0x4e   : > { %p2311_p10 = pneg %p2310_p8 }
  0x50   : > { %p2316_p4 = pnand %p2315_p6, %p2311_p10 }
  0x52   : > { %2319 = shalt.err (!%p2316_p4)
}
  0x53   : > { %s2320_s5 = scalar_lea.vmem %s454_s17, 16  ;;  %s2521_s20 = smov [#allocation10]  }
  0x54   : > { %p2321_p12 = scmp.ne.s32.totalorder %s454_s17, %s2320_s5  ;;  %s2325_s22 = sshll.u32 %s2521_s20, 4  ;;  %s2326_s22 = int_to_ptr.vmem [resolvable:$false] %s2325_s22 }
  0x55   : > { %s2327_s30 = scalar_lea.vmem %s2326_s22, 32  ;;  %p2328_p1 = scmp.lt.s32.totalorder %s454_s17, %s2326_s22 }
  0x56   : > { %p2323_p7 = pnand %p2321_p12, %p2704_p2  ;;  %p2329_p3 = scmp.lt.s32.totalorder %s2327_s30, %s2320_s5 }
  0x58   : > { %p2324_p11 = pneg %p2323_p7  ;;  %p2330_p5 = por %p2329_p3, %p2328_p1 }
  0x5a   : > { %p2331_p8 = pnand %p2330_p5, %p2324_p11 }
  0x5c   : > { %2334 = shalt.err (!%p2331_p8)
}
  0x5d   : > { %2115 = dma.hbm_to_vmem [thread:$0]  (!%p2692_p9), %s451_s15, 16, %s454_s17, %s2698_s16  }
  0x5e   : > { %s2522_s0 = smov [#allocation4]   ;;  %s1798_s3 = sshll.u32 %s2669_s24, 6 }
  0x5f   : > { %s383_s2 = sshll.u32 %s2522_s0, 4  ;;  %p3047_p13 = scmp.ne.s32.totalorder %s3042_s23, 0  ;;  %s384_s2 = int_to_ptr.vmem [resolvable:$true] %s383_s2 }
  0x60   : > { %s2346_s9 = scalar_lea.vmem %s384_s2, 64  ;;  %p2354_p12 = scmp.lt.s32.totalorder %s384_s2, %s384_s2 }
  0x61   : > { %p2347_p10 = scmp.ne.s32.totalorder %s384_s2, %s2346_s9  ;;  %p3048_p0 = pneg %p3047_p13 }
  0x62   : > { %p2355_p7 = scmp.lt.s32.totalorder %s2346_s9, %s2346_s9 }
  0x63   : > { %p2349_p6 = pnand %p2347_p10, %p3048_p0 }
  0x64   : > { %p2356_p11 = por %p2355_p7, %p2354_p12 }
  0x65   : > { %p2350_p4 = pneg %p2349_p6 }
  0x67   : > { %p2357_p1 = pnand %p2356_p11, %p2350_p4 }
  0x69   : > { %2360 = shalt.err (!%p2357_p1)
}
  0x6a   : > { %2102 = dma.hbm_to_vmem [thread:$0]  (!%p3047_p13), %s3005_s4, 64, %s384_s2, [#allocation5]  }
  0x6b   : > { %s1918_s15 = sshll.u32 %s2515_s28, 10  ;;  %s464_s17 = scalar_lea.vmem [#allocation11], %s1798_s3 }
  0x6c   : > { %s471_s5 = sshll.u32 %s464_s17, 4  ;;  %s2763_s30 = scalar_lea.hbm %s3012_s11, %s1918_s15  ;;  %s472_s5 = int_to_ptr.vmem [resolvable:$true] %s471_s5 }
  0x6d   : > { %s2361_s0 = scalar_lea.hbm %s2763_s30, 1024  ;;  %s2366_s2 = scalar_lea.hbm %s3012_s11, 3072 }
  0x6e   : > { %p2362_p3 = scmp.ne.s32.totalorder %s2763_s30, %s2361_s0  ;;  %p2367_p10 = scmp.lt.s32.totalorder %s2763_s30, %s3012_s11 }
  0x6f   : > { %p2368_p0 = scmp.lt.s32.totalorder %s2366_s2, %s2361_s0 }
  0x70   : > { %p2364_p5 = pnand %p2362_p3, %p2704_p2 }
  0x71   : > { %p2369_p6 = por %p2368_p0, %p2367_p10 }
  0x72   : > { %p2365_p8 = pneg %p2364_p5 }
  0x74   : > { %p2370_p4 = pnand %p2369_p6, %p2365_p8 }
  0x76   : > { %2373 = shalt.err (!%p2370_p4)
}
  0x77   : > { %s2374_s15 = scalar_lea.vmem %s472_s5, 1024  ;;  %s2523_s17 = smov [#allocation11]  }
  0x78   : > { %p2375_p12 = scmp.ne.s32.totalorder %s472_s5, %s2374_s15  ;;  %s2379_s20 = sshll.u32 %s2523_s17, 4  ;;  %s2380_s20 = int_to_ptr.vmem [resolvable:$false] %s2379_s20 }
  0x79   : > { %s2381_s22 = scalar_lea.vmem %s2380_s20, 2048  ;;  %p2382_p1 = scmp.lt.s32.totalorder %s472_s5, %s2380_s20 }
  0x7a   : > { %p2377_p7 = pnand %p2375_p12, %p2704_p2  ;;  %p2383_p3 = scmp.lt.s32.totalorder %s2381_s22, %s2374_s15 }
  0x7c   : > { %p2378_p11 = pneg %p2377_p7  ;;  %p2384_p5 = por %p2383_p3, %p2382_p1 }
  0x7e   : > { %p2385_p13 = pnand %p2384_p5, %p2378_p11 }
  0x80   : > { %2388 = shalt.err (!%p2385_p13)
}
  0x81   : > { %2118 = dma.hbm_to_vmem [thread:$0]  (!%p2692_p9), %s2763_s30, 1024, %s472_s5, %s2698_s16, %s2519_s21, %s2519_s21, %s2520_s25  }
  0x82   : > { %s2524_s0 = smov [#allocation6]   ;;  %s2525_s13 = smov [#allocation7]  }
  0x83   : > { %s397_s9 = sshll.u32 %s2524_s0, 4  ;;  %s411_s2 = sshll.u32 %s2525_s13, 4  ;;  %s398_s9 = int_to_ptr.vmem [resolvable:$true] %s397_s9  ;;  %s412_s2 = int_to_ptr.vmem [resolvable:$true] %s411_s2 }
  0x84   : > { %s2400_s3 = scalar_lea.vmem %s398_s9, 64  ;;  %p3049_p10 = scmp.ne.s32.totalorder %s3042_s23, 0 }
  0x85   : > { %p2401_p8 = scmp.ne.s32.totalorder %s398_s9, %s2400_s3  ;;  %p2408_p4 = scmp.lt.s32.totalorder %s398_s9, %s398_s9 }
  0x86   : > { %p3050_p0 = pneg %p3049_p10  ;;  %p2409_p12 = scmp.lt.s32.totalorder %s2400_s3, %s2400_s3 }
  0x88   : > { %p2403_p13 = pnand %p2401_p8, %p3050_p0  ;;  %p2410_p7 = por %p2409_p12, %p2408_p4 }
  0x8a   : > { %p2404_p6 = pneg %p2403_p13 }
  0x8c   : > { %p2411_p11 = pnand %p2410_p7, %p2404_p6 }
  0x8e   : > { %2414 = shalt.err (!%p2411_p11)
}
  0x8f   : > { %2105 = dma.hbm_to_vmem [thread:$0]  (!%p3049_p10), %s3007_s6, 64, %s398_s9, [#allocation5]  }
  0x90   : > { %s2426_s5 = scalar_lea.vmem %s412_s2, 64  ;;  %p3051_p3 = pmov %p3050_p0 }
  0x91   : > { %p2427_p1 = scmp.ne.s32.totalorder %s412_s2, %s2426_s5  ;;  %p2434_p8 = scmp.lt.s32.totalorder %s412_s2, %s412_s2 }
  0x92   : > { %p2435_p0 = scmp.lt.s32.totalorder %s2426_s5, %s2426_s5 }
  0x93   : > { %p2429_p5 = pnand %p2427_p1, %p3051_p3 }
  0x94   : > { %p2436_p13 = por %p2435_p0, %p2434_p8 }
  0x95   : > { %p2430_p9 = pneg %p2429_p5 }
  0x97   : > { %p2437_p2 = pnand %p2436_p13, %p2430_p9 }
  0x99   : > { %2440 = shalt.err (!%p2437_p2)
}
  0x9a   : > { %2108 = dma.hbm_to_vmem [thread:$0]  (!%p3049_p10), %s3009_s8, 64, %s412_s2, [#allocation8]  }
  0x9b   : > { %s489_s20 = scalar_lea.hbm %s3013_s12, %s1797_s14  ;;  %s484_s22 = scalar_lea.vmem [#allocation12], %s2669_s24 }
  0x9c   : > { %s491_s0 = sshll.u32 %s484_s22, 4  ;;  %s2441_s9 = scalar_lea.hbm %s489_s20, 16  ;;  %s492_s0 = int_to_ptr.vmem [resolvable:$true] %s491_s0 }
  0x9d   : > { %p2442_p9 = scmp.ne.s32.totalorder %s489_s20, %s2441_s9  ;;  %p3052_p2 = scmp.ne.s32.totalorder %s3046_s27, 0 }
  0x9e   : > { %s2446_s3 = scalar_lea.hbm %s3013_s12, 48  ;;  %p2447_p10 = scmp.lt.s32.totalorder %s489_s20, %s3013_s12 }
  0x9f   : > { %p2444_p6 = pnand %p2442_p9, %p3052_p2  ;;  %p2448_p12 = scmp.lt.s32.totalorder %s2446_s3, %s2441_s9 }
  0xa1   : > { %p2445_p4 = pneg %p2444_p6  ;;  %p2449_p7 = por %p2448_p12, %p2447_p10 }
  0xa3   : > { %p2450_p11 = pnand %p2449_p7, %p2445_p4 }
  0xa5   : > { %2453 = shalt.err (!%p2450_p11)
}
  0xa6   : > { %s2454_s28 = scalar_lea.vmem %s492_s0, 16  ;;  %s2526_s24 = smov [#allocation12]  }
  0xa7   : > { %p2455_p1 = scmp.ne.s32.totalorder %s492_s0, %s2454_s28  ;;  %s2459_s14 = sshll.u32 %s2526_s24, 4  ;;  %s2460_s14 = int_to_ptr.vmem [resolvable:$false] %s2459_s14 }
  0xa8   : > { %s2461_s2 = scalar_lea.vmem %s2460_s14, 32  ;;  %p2462_p8 = scmp.lt.s32.totalorder %s492_s0, %s2460_s14 }
  0xa9   : > { %p2457_p3 = pnand %p2455_p1, %p3052_p2  ;;  %p2463_p0 = scmp.lt.s32.totalorder %s2461_s2, %s2454_s28 }
  0xab   : > { %p2458_p5 = pneg %p2457_p3  ;;  %p2464_p13 = por %p2463_p0, %p2462_p8 }
  0xad   : > { %p2465_p9 = pnand %p2464_p13, %p2458_p5 }
  0xaf   : > { %2468 = shalt.err (!%p2465_p9)
}
  0xb0   : > { %p3053_p6 = scmp.ne.s32.totalorder %s3045_s7, 0  ;;  %p3054_p4 = scmp.ne.s32.totalorder %s3041_s19, 0 }
  0xb1   : > { %p3055_p10 = scmp.eq.s32.totalorder (!%p3054_p4), %s2625_s29, 0 }
  0xb2   : > { %2121 = dma.hbm_to_vmem [thread:$0]  (!%p3053_p6), %s489_s20, 16, %s492_s0, %s2698_s16  }
  0xb3   : > { %500 = sbr.rel (%p3054_p4) target bundleno = 1527 (0x5f7), region = 72 }
  0xb8   : > { %2486 = dma.done.wait (%p3055_p10), [#allocation3], 64   ;;  %p3056_p2 = pmov %p3055_p10 }
  0xba   : > { %2488 = vsyncadd (%p3056_p2), [#allocation3], 4294967232  ;;  %p3057_p12 = pmov %p3056_p2 }
  0xbb   : > { %p3058_p7 = pmov %p3056_p2 }
  0xbc   : > { %2490 = dma.done.wait (%p3057_p12), [#allocation5], 128  }
  0xbd   : > { %2492 = vsyncadd (%p3058_p7), [#allocation5], 4294967168  ;;  %p3059_p11 = pmov %p3056_p2 }
  0xbe   : > { %p3060_p1 = pmov %p3056_p2 }
  0xbf   : > { %2494 = dma.done.wait (%p3059_p11), [#allocation8], 64  }
  0xc0   : > { %2496 = vsyncadd (%p3060_p1), [#allocation8], 4294967232  ;;  %s518_s7 = sand.u32 1, %s2625_s29   ;;  %s520_s19 = sand.u32 1, %s2507_s26  }
  0xc1   : > { %s1807_s16 = sshll.u32 %s520_s19, 7  ;;  %s519_s27 = scalar_lea.sflag [#allocation3], %s518_s7 }
  0xc2   : > { %s2836_s5 = scalar_lea.vmem [#allocation9], %s1807_s16  ;;  %p3061_p3 = scmp.ne.s32.totalorder %s3040_s18, 0 }
  0xc4   : > { %2498 = dma.done.wait (%p3061_p3), %s519_s27, 3104  }
  0xc5   : > { %2500 = vsyncadd (%p3061_p3), %s519_s27, 4294964192  ;;  %s1808_s30 = sshll.u32 %s520_s19, 6  ;;  %p602_p5 = scmp.lt.s32.totalorder %s2625_s29, 2 }
  0xc6   : > { %s3062_s22 = sld [smem:[#allocation27_spill]]  ;;  %s2849_s9 = scalar_lea.vmem [#allocation10], %s520_s19 }
  0xc7   : > { %s603_s1 = scalar_select %p602_p5, %s2625_s29, 2 }
  0xc8   : > { %s2851_s23 = scalar_lea.vmem [#allocation11], %s1808_s30  ;;  %s2853_s13 = scalar_lea.vmem [#allocation12], %s520_s19 }
  0xc9   : > { %s1809_s15 = sshll.u32 %s603_s1, 3  ;;  %p3063_p8 = scmp.ne.s32.totalorder %s2625_s29, 0 }
  0xca   : > { %s3064_s21 = sld [smem:[#allocation20_spill]] (!%p3063_p8) }
  0xcb   : > { %610 = sbr.rel (%p3063_p8) target bundleno = 643 (0x283), region = 108  ;;  %s3065_s24 = sld [smem:[#allocation23_spill]] (!%p3063_p8) }
  0xcc   : > { %s2847_s0 = scalar_lea.vmem %s3062_s22, %s1809_s15 }
  0xd0   : > { %v2178_v0 = vld [vmem:[%s2836_s5 + $0x78] sm:$0xff]   ;;  %v2180_v2 = vld [vmem:[%s2836_s5 + $0x70] sm:$0xff]   ;;  %v2182_v4 = vld [vmem:[%s2836_s5 + $0x68] sm:$0xff]   ;;  %v2527_v5 = vmov 0.0   ;;  %v630_v11 = vlaneseq  ;;  %v2528_v16 = vmov 1983009808  }
  0xd1   : > { %v2179_v1 = vld [vmem:[%s2836_s5 + $0x38] sm:$0xff]   ;;  %1919 = vmatprep.subr.bf16.mxu0 %v2178_v0  ;;  %v2181_v3 = vld [vmem:[%s2836_s5 + $0x30] sm:$0xff]   ;;  %2012 = vmatprep.subr.bf16.mxu1 %v2527_v5  ;;  %v2183_v6 = vld [vmem:[%s2836_s5 + $0x28] sm:$0xff]   ;;  %v628_v17 = vunpack.c.l.s4 %v2528_v16  ;;  %vm648_vm0 = vcmask 1041408   ;;  %vm651_vm1 = vcmask 1043456   ;;  %vm654_vm2 = vcmask 1045504  }
  0xd2   : > { %1920 = vmatpush3.bf16.msra.mxu0 %v2179_v1  ;;  %v2184_v7 = vld [vmem:[%s2836_s5 + $0x60] sm:$0xff]   ;;  %v2186_v9 = vld [vmem:[%s2836_s5 + $0x58] sm:$0xff]   ;;  %v2188_v12 = vld [vmem:[%s2836_s5 + $0x50] sm:$0xff]   ;;  %v631_v18 = vshrl.u32 %v630_v11, 7  ;;  %vm2529_vm4 = vmmov 0  }
  0xd3   : > { %1921 = vmatprep.subr.bf16.mxu0 %v2180_v2  ;;  %v2185_v8 = vld [vmem:[%s2836_s5 + $0x20] sm:$0xff]   ;;  %v2187_v10 = vld [vmem:[%s2836_s5 + $0x18] sm:$0xff]   ;;  %v2189_v13 = vld [vmem:[%s2836_s5 + $0x10] sm:$0xff]   ;;  %v629_v22 = vunpack.c.0.s8 %v628_v17  ;;  %2028 = vmatprep.mubr.msk.bf16.mxu1 %vm2529_vm4, %v2527_v5 }
  0xd4   : > { %v2190_v14 = vld [vmem:[%s2836_s5 + $0x48] sm:$0xff]   ;;  %v1812_v15 = vld.sshfl [vmem:[#allocation6] sm:$0x33 pattern:$0x76325410]  ;;  %v2192_v25 = vld [vmem:[%s2836_s5 + $0x40] sm:$0xff]  }
  0xd5   : > { %v2195_v19 = vld [vmem:[%s2851_s23 + $0x38] sm:$0xff]   ;;  %v1811_v20 = vld.sshfl [vmem:[%s3064_s21] sm:$0x33 pattern:$0x76325410]  ;;  %v2191_v24 = vld [vmem:[%s2836_s5 + $0x8] sm:$0xff]   ;;  %v632_v26 = vsub.s32 %v629_v22, %v631_v18  ;;  %v645_v27 = vcombine.low %v1812_v15, %v1812_v15 }
  0xd6   : > { %1922 = vmatpush3.bf16.msra.mxu0 %v2181_v3  ;;  %v2194_v21 = vld [vmem:[%s3065_s24] ss:$0 sps:$4 sm:$0xff]   ;;  %2013 = vmatpush3.bf16.msra.mxu1 %v2195_v19  ;;  %v2196_v23 = vld [vmem:[%s2851_s23 + $0x30] sm:$0xff]   ;;  %v622_v28 = vcombine.high %v1811_v20, %v1811_v20  ;;  %v2193_v31 = vld [vmem:[%s2836_s5] sm:$0xff]  }
  0xd7   : > { %1923 = vmatprep.subr.bf16.mxu0 %v2182_v4  ;;  %2014 = vmatprep.subr.bf16.mxu1 %v2527_v5  ;;  %v633_v29 = vrot.slane %v2194_v21, %v632_v26  ;;  %v2197_v30 = vld [vmem:[%s2851_s23 + $0x28] sm:$0xff]   ;;  %v2198_v36 = vld [vmem:[%s2851_s23 + $0x20] sm:$0xff]   ;;  %vm1830_vm3 = vmpackc.low %vm654_vm2, %vm654_vm2 }
  0xd8   : > { %v2199_v40 = vld [vmem:[%s2851_s23 + $0x18] sm:$0xff]   ;;  %v2200_v41 = vld [vmem:[%s2851_s23 + $0x10] sm:$0xff]   ;;  %v2201_v42 = vld [vmem:[%s2851_s23 + $0x8] sm:$0xff]  }
  0xd9   : > { %v634_v32 = vcombine.high %v633_v29, %v633_v29  ;;  %v649_v33 = vsel %vm648_vm0, %v1811_v20, %v633_v29  ;;  %v2202_v43 = vld [vmem:[%s2851_s23] sm:$0xff]   ;;  %v1813_v45 = vld [vmem:[%s2849_s9] ss:$0 sm:$0xff] }
  0xda   : > { %1924 = vmatpush3.bf16.msra.mxu0 %v2183_v6  ;;  %2015 = vmatpush3.bf16.msra.mxu1 %v2196_v23  ;;  %v652_v34 = vsel %vm651_vm1, %v649_v33, %v645_v27  ;;  %v1836_v53 = vld [vmem:[%s2853_s13] ss:$0 sm:$0xff] }
  0xdb   : > { %1925 = vmatprep.subr.bf16.mxu0 %v2184_v7  ;;  %2016 = vmatprep.subr.bf16.mxu1 %v2527_v5  ;;  %v650_v35 = vsel %vm648_vm0, %v622_v28, %v634_v32  ;;  %v1834_v38 = vpack.c.bf16 %v652_v34, %v652_v34 }
  0xdc   : > { %v653_v37 = vsel %vm651_vm1, %v650_v35, %v1812_v15 }
  0xdd   : > { %v1831_v39 = vpack.c.bf16 %v653_v37, %v653_v37 }
  0xde   : > { %1926 = vmatpush3.bf16.msra.mxu0 %v2185_v8  ;;  %2017 = vmatpush3.bf16.msra.mxu1 %v2197_v30 }
  0xdf   : > { %1927 = vmatprep.subr.bf16.mxu0 %v2186_v9  ;;  %2018 = vmatprep.subr.bf16.mxu1 %v2527_v5 }
  0xe0   : > { %1832 = vmatprep.mubr.msk.bf16.mxu0 %vm1830_vm3, %v1831_v39 }
  0xe2   : > { %1928 = vmatpush3.bf16.msra.mxu0 %v2187_v10  ;;  %2019 = vmatpush3.bf16.msra.mxu1 %v2198_v36 }
  0xe3   : > { %1929 = vmatprep.subr.bf16.mxu0 %v2188_v12  ;;  %2020 = vmatprep.subr.bf16.mxu1 %v2527_v5 }
  0xe6   : > { %1930 = vmatpush3.bf16.msra.mxu0 %v2189_v13  ;;  %2021 = vmatpush3.bf16.msra.mxu1 %v2199_v40 }
  0xe7   : > { %1931 = vmatprep.subr.bf16.mxu0 %v2190_v14  ;;  %2022 = vmatprep.subr.bf16.mxu1 %v2527_v5 }
  0xea   : > { %1932 = vmatpush3.bf16.msra.mxu0 %v2191_v24  ;;  %2023 = vmatpush3.bf16.msra.mxu1 %v2200_v41 }
  0xeb   : > { %1933 = vmatprep.subr.bf16.mxu0 %v2192_v25  ;;  %2024 = vmatprep.subr.bf16.mxu1 %v2527_v5 }
  0xee   : > { %1934 = vmatpush3.bf16.msra.mxu0 %v2193_v31  ;;  %2025 = vmatpush3.bf16.msra.mxu1 %v2201_v42 }
  0xef   : > { %2026 = vmatprep.subr.bf16.mxu1 %v2527_v5 }
  0xf1   : > { %1835 = vmatmul.mubr.msk.bf16.vlgmr.msra.gmra.mxu0 %vm1830_vm3, %v1834_v38 }
  0xf2   : > { %2027 = vmatpush3.bf16.msra.mxu1 %v2202_v43 }
 0x1b1   : > { %v1935_v44 = vpop.f32.mrf.mxu0 }
 0x1b3   : > { %v1936_v46 = vpop.f32.mrf.mxu0 }
 0x1b4   : > { %v1937_v47 = vadd.f32 %v1936_v46, %v1935_v44 }
 0x1b5   : > { %v1938_v48 = vpop.f32.mrf.mxu0 }
 0x1b6   : > { %v829_v49 = vadd.f32 %v1937_v47, %v1813_v45 }
 0x1b7   : > { %v1939_v50 = vpop.f32.mrf.mxu0 }
 0x1b8   : > { %v834_v51 = vmax.f32 %v829_v49, 0.0 }
 0x1ba   : > { %v835_v52 = vpack.c.bf16 %v834_v51, %v834_v51 }
 0x1bc   : > { %2029 = vmatmul.mubr.bf16.vlgmr.msra.gmra.mxu1 %v835_v52 }
 0x27c   : > { %v941_v54 = vpop.f32.mrf.mxu1 }
 0x27d   : > { %v942_v55 = vadd.f32 %v1836_v53, %v941_v54 }
 0x27e   : > { %v2030_v56 = vpop.f32.mrf.mxu1 }
 0x27f   : > { %947 = vst [vmem:[%s2847_s0] sm:$0xff] %v942_v55 }
 0x280   : > { %v944_v57 = vpop.f32.mrf.mxu1 }
 0x282   : > { %v2031_v58 = vpop.f32.mrf.mxu1 }
 0x283 PF: > { %p1845_p0 = scmp.ne.s32.totalorder %s2625_s29, 1 }
 0x284   : > { %s3066_s7 = sld [smem:[#allocation25_spill]] (!%p1845_p0) }
 0x285   : > { %951 = sbr.rel (%p1845_p0) target bundleno = 1085 (0x43d), region = 112  ;;  %s3067_s27 = sld [smem:[#allocation21_spill]] (!%p1845_p0) }
 0x28a   : > { %v2203_v59 = vld [vmem:[%s2836_s5 + $0x78] sm:$0xff]   ;;  %v2205_v61 = vld [vmem:[%s2836_s5 + $0x70] sm:$0xff]   ;;  %v2207_v63 = vld [vmem:[%s2836_s5 + $0x68] sm:$0xff]   ;;  %v2530_v0 = vmov 0.0   ;;  %v971_v6 = vlaneseq  ;;  %v2531_v11 = vmov 1983009808  }
 0x28b   : > { %v2204_v60 = vld [vmem:[%s2836_s5 + $0x38] sm:$0xff]   ;;  %1950 = vmatprep.subr.bf16.mxu0 %v2203_v59  ;;  %v2206_v62 = vld [vmem:[%s2836_s5 + $0x30] sm:$0xff]   ;;  %2032 = vmatprep.subr.bf16.mxu1 %v2530_v0  ;;  %v2208_v1 = vld [vmem:[%s2836_s5 + $0x28] sm:$0xff]   ;;  %v969_v12 = vunpack.c.l.s4 %v2531_v11  ;;  %vm989_vm5 = vcmask 1041408   ;;  %vm992_vm6 = vcmask 1043456   ;;  %vm995_vm7 = vcmask 1045504  }
 0x28c   : > { %1951 = vmatpush3.bf16.msra.mxu0 %v2204_v60  ;;  %v2209_v2 = vld [vmem:[%s2836_s5 + $0x60] sm:$0xff]   ;;  %v2211_v4 = vld [vmem:[%s2836_s5 + $0x58] sm:$0xff]   ;;  %v2213_v7 = vld [vmem:[%s2836_s5 + $0x50] sm:$0xff]   ;;  %v972_v13 = vshrl.u32 %v971_v6, 7  ;;  %vm2532_vm9 = vmmov 0  }
 0x28d   : > { %1952 = vmatprep.subr.bf16.mxu0 %v2205_v61  ;;  %v2210_v3 = vld [vmem:[%s2836_s5 + $0x20] sm:$0xff]   ;;  %v2212_v5 = vld [vmem:[%s2836_s5 + $0x18] sm:$0xff]   ;;  %v2214_v8 = vld [vmem:[%s2836_s5 + $0x10] sm:$0xff]   ;;  %v970_v17 = vunpack.c.0.s8 %v969_v12  ;;  %2048 = vmatprep.mubr.msk.bf16.mxu1 %vm2532_vm9, %v2530_v0 }
 0x28e   : > { %v2215_v9 = vld [vmem:[%s2836_s5 + $0x48] sm:$0xff]   ;;  %v1847_v10 = vld.sshfl [vmem:[%s3066_s7] sm:$0x33 pattern:$0x76325410]  ;;  %v2220_v14 = vld [vmem:[%s2851_s23 + $0x38] sm:$0xff]  }
 0x28f   : > { %v1846_v15 = vld.sshfl [vmem:[%s3067_s27] sm:$0x33 pattern:$0x76325410]  ;;  %v2219_v16 = vld [vmem:[#allocation4] ss:$0 sps:$4 sm:$0xff]   ;;  %2033 = vmatpush3.bf16.msra.mxu1 %v2220_v14  ;;  %v973_v21 = vsub.s32 %v970_v17, %v972_v13  ;;  %v986_v22 = vcombine.low %v1847_v10, %v1847_v10  ;;  %vm1865_vm8 = vmpackc.low %vm995_vm7, %vm995_vm7 }
 0x290   : > { %1953 = vmatpush3.bf16.msra.mxu0 %v2206_v62  ;;  %v2221_v18 = vld [vmem:[%s2851_s23 + $0x30] sm:$0xff]   ;;  %v2216_v19 = vld [vmem:[%s2836_s5 + $0x8] sm:$0xff]   ;;  %2034 = vmatprep.subr.bf16.mxu1 %v2530_v0  ;;  %v2217_v20 = vld [vmem:[%s2836_s5 + $0x40] sm:$0xff]   ;;  %v963_v23 = vcombine.high %v1846_v15, %v1846_v15 }
 0x291   : > { %1954 = vmatprep.subr.bf16.mxu0 %v2207_v63  ;;  %v974_v24 = vrot.slane %v2219_v16, %v973_v21  ;;  %v2222_v25 = vld [vmem:[%s2851_s23 + $0x28] sm:$0xff]   ;;  %v2218_v26 = vld [vmem:[%s2836_s5] sm:$0xff]   ;;  %v2225_v36 = vld [vmem:[%s2851_s23 + $0x10] sm:$0xff]  }
 0x292   : > { %v2223_v31 = vld [vmem:[%s2851_s23 + $0x20] sm:$0xff]   ;;  %v2224_v35 = vld [vmem:[%s2851_s23 + $0x18] sm:$0xff]   ;;  %v2226_v37 = vld [vmem:[%s2851_s23 + $0x8] sm:$0xff]  }
 0x293   : > { %2035 = vmatpush3.bf16.msra.mxu1 %v2221_v18  ;;  %v975_v27 = vcombine.high %v974_v24, %v974_v24  ;;  %v990_v28 = vsel %vm989_vm5, %v1846_v15, %v974_v24  ;;  %v2227_v38 = vld [vmem:[%s2851_s23] sm:$0xff]   ;;  %v1848_v40 = vld [vmem:[%s2849_s9] ss:$0 sm:$0xff] }
 0x294   : > { %1955 = vmatpush3.bf16.msra.mxu0 %v2208_v1  ;;  %2036 = vmatprep.subr.bf16.mxu1 %v2530_v0  ;;  %v993_v29 = vsel %vm992_vm6, %v990_v28, %v986_v22  ;;  %v1871_v48 = vld [vmem:[%s2853_s13] ss:$0 sm:$0xff] }
 0x295   : > { %1956 = vmatprep.subr.bf16.mxu0 %v2209_v2  ;;  %v991_v30 = vsel %vm989_vm5, %v963_v23, %v975_v27  ;;  %v1869_v33 = vpack.c.bf16 %v993_v29, %v993_v29 }
 0x296   : > { %v994_v32 = vsel %vm992_vm6, %v991_v30, %v1847_v10 }
 0x297   : > { %2037 = vmatpush3.bf16.msra.mxu1 %v2222_v25  ;;  %v1866_v34 = vpack.c.bf16 %v994_v32, %v994_v32 }
 0x298   : > { %1957 = vmatpush3.bf16.msra.mxu0 %v2210_v3  ;;  %2038 = vmatprep.subr.bf16.mxu1 %v2530_v0 }
 0x299   : > { %1958 = vmatprep.subr.bf16.mxu0 %v2211_v4  ;;  %1867 = vmatprep.mubr.msk.bf16.mxu0 %vm1865_vm8, %v1866_v34 }
 0x29b   : > { %2039 = vmatpush3.bf16.msra.mxu1 %v2223_v31 }
 0x29c   : > { %1959 = vmatpush3.bf16.msra.mxu0 %v2212_v5  ;;  %2040 = vmatprep.subr.bf16.mxu1 %v2530_v0 }
 0x29d   : > { %1960 = vmatprep.subr.bf16.mxu0 %v2213_v7 }
 0x29f   : > { %2041 = vmatpush3.bf16.msra.mxu1 %v2224_v35 }
 0x2a0   : > { %1961 = vmatpush3.bf16.msra.mxu0 %v2214_v8  ;;  %2042 = vmatprep.subr.bf16.mxu1 %v2530_v0 }
 0x2a1   : > { %1962 = vmatprep.subr.bf16.mxu0 %v2215_v9 }
 0x2a3   : > { %2043 = vmatpush3.bf16.msra.mxu1 %v2225_v36 }
 0x2a4   : > { %1963 = vmatpush3.bf16.msra.mxu0 %v2216_v19  ;;  %2044 = vmatprep.subr.bf16.mxu1 %v2530_v0 }
 0x2a5   : > { %1964 = vmatprep.subr.bf16.mxu0 %v2217_v20 }
 0x2a7   : > { %2045 = vmatpush3.bf16.msra.mxu1 %v2226_v37 }
 0x2a8   : > { %1965 = vmatpush3.bf16.msra.mxu0 %v2218_v26  ;;  %2046 = vmatprep.subr.bf16.mxu1 %v2530_v0 }
 0x2ab   : > { %1870 = vmatmul.mubr.msk.bf16.vlgmr.msra.gmra.mxu0 %vm1865_vm8, %v1869_v33  ;;  %2047 = vmatpush3.bf16.msra.mxu1 %v2227_v38 }
 0x36b   : > { %v1966_v39 = vpop.f32.mrf.mxu0 }
 0x36d   : > { %v1967_v41 = vpop.f32.mrf.mxu0 }
 0x36e   : > { %v1968_v42 = vadd.f32 %v1967_v41, %v1966_v39 }
 0x36f   : > { %v1969_v43 = vpop.f32.mrf.mxu0 }
 0x370   : > { %v1170_v44 = vadd.f32 %v1968_v42, %v1848_v40 }
 0x371   : > { %v1970_v45 = vpop.f32.mrf.mxu0 }
 0x372   : > { %v1175_v46 = vmax.f32 %v1170_v44, 0.0 }
 0x374   : > { %v1176_v47 = vpack.c.bf16 %v1175_v46, %v1175_v46 }
 0x376   : > { %2049 = vmatmul.mubr.bf16.vlgmr.msra.gmra.mxu1 %v1176_v47 }
 0x436   : > { %v1282_v49 = vpop.f32.mrf.mxu1 }
 0x437   : > { %v1283_v50 = vadd.f32 %v1871_v48, %v1282_v49 }
 0x438   : > { %v2050_v51 = vpop.f32.mrf.mxu1 }
 0x439   : > { %1288 = vst [vmem:[%s2847_s0] sm:$0xff] %v1283_v50 }
 0x43a   : > { %v1285_v52 = vpop.f32.mrf.mxu1 }
 0x43c   : > { %v2051_v53 = vpop.f32.mrf.mxu1 }
 0x43d PF: > { %p1880_p13 = scmp.ne.s32.totalorder %s2625_s29, 2 }
 0x43e   : > { %s3068_s1 = sld [smem:[#allocation24_spill]] (!%p1880_p13) }
 0x43f   : > { %1292 = sbr.rel (%p1880_p13) target bundleno = 1527 (0x5f7), region = 116 }
 0x444   : > { %v2228_v54 = vld [vmem:[%s2836_s5 + $0x78] sm:$0xff]   ;;  %v2230_v56 = vld [vmem:[%s2836_s5 + $0x70] sm:$0xff]   ;;  %v2232_v58 = vld [vmem:[%s2836_s5 + $0x68] sm:$0xff]   ;;  %v2533_v59 = vmov 0.0   ;;  %v1312_v1 = vlaneseq  ;;  %v2534_v6 = vmov 1983009808  }
 0x445   : > { %v2229_v55 = vld [vmem:[%s2836_s5 + $0x38] sm:$0xff]   ;;  %1981 = vmatprep.subr.bf16.mxu0 %v2228_v54  ;;  %v2231_v57 = vld [vmem:[%s2836_s5 + $0x30] sm:$0xff]   ;;  %2052 = vmatprep.subr.bf16.mxu1 %v2533_v59  ;;  %v2233_v60 = vld [vmem:[%s2836_s5 + $0x28] sm:$0xff]   ;;  %v1310_v7 = vunpack.c.l.s4 %v2534_v6  ;;  %vm1330_vm10 = vcmask 1041408   ;;  %vm1333_vm11 = vcmask 1043456   ;;  %vm1336_vm12 = vcmask 1045504  }
 0x446   : > { %1982 = vmatpush3.bf16.msra.mxu0 %v2229_v55  ;;  %v2234_v61 = vld [vmem:[%s2836_s5 + $0x60] sm:$0xff]   ;;  %v2236_v63 = vld [vmem:[%s2836_s5 + $0x58] sm:$0xff]   ;;  %v2238_v2 = vld [vmem:[%s2836_s5 + $0x50] sm:$0xff]   ;;  %v1313_v8 = vshrl.u32 %v1312_v1, 7  ;;  %vm2535_vm14 = vmmov 0  }
 0x447   : > { %1983 = vmatprep.subr.bf16.mxu0 %v2230_v56  ;;  %v2235_v62 = vld [vmem:[%s2836_s5 + $0x20] sm:$0xff]   ;;  %v2237_v0 = vld [vmem:[%s2836_s5 + $0x18] sm:$0xff]   ;;  %v2239_v3 = vld [vmem:[%s2836_s5 + $0x10] sm:$0xff]   ;;  %v1311_v12 = vunpack.c.0.s8 %v1310_v7  ;;  %2068 = vmatprep.mubr.msk.bf16.mxu1 %vm2535_vm14, %v2533_v59 }
 0x448   : > { %v2240_v4 = vld [vmem:[%s2836_s5 + $0x48] sm:$0xff]   ;;  %v1882_v5 = vld.sshfl [vmem:[#allocation7] sm:$0x33 pattern:$0x76325410]  ;;  %v2246_v13 = vld [vmem:[%s2851_s23 + $0x30] sm:$0xff]  }
 0x449   : > { %v2245_v9 = vld [vmem:[%s2851_s23 + $0x38] sm:$0xff]   ;;  %v1881_v10 = vld.sshfl [vmem:[#allocation2] sm:$0x33 pattern:$0x76325410]  ;;  %v2241_v14 = vld [vmem:[%s2836_s5 + $0x8] sm:$0xff]   ;;  %v1314_v16 = vsub.s32 %v1311_v12, %v1313_v8  ;;  %v1327_v17 = vcombine.low %v1882_v5, %v1882_v5 }
 0x44a   : > { %1984 = vmatpush3.bf16.msra.mxu0 %v2231_v57  ;;  %v2244_v11 = vld [vmem:[%s3068_s1] ss:$0 sps:$4 sm:$0xff]   ;;  %2053 = vmatpush3.bf16.msra.mxu1 %v2245_v9  ;;  %v2242_v15 = vld [vmem:[%s2836_s5 + $0x40] sm:$0xff]   ;;  %v1304_v18 = vcombine.high %v1881_v10, %v1881_v10  ;;  %vm1900_vm13 = vmpackc.low %vm1336_vm12, %vm1336_vm12 }
 0x44b   : > { %1985 = vmatprep.subr.bf16.mxu0 %v2232_v58  ;;  %2054 = vmatprep.subr.bf16.mxu1 %v2533_v59  ;;  %v1315_v19 = vrot.slane %v2244_v11, %v1314_v16  ;;  %v2247_v20 = vld [vmem:[%s2851_s23 + $0x28] sm:$0xff]   ;;  %v2243_v21 = vld [vmem:[%s2836_s5] sm:$0xff]   ;;  %v2250_v31 = vld [vmem:[%s2851_s23 + $0x10] sm:$0xff]  }
 0x44c   : > { %v2248_v26 = vld [vmem:[%s2851_s23 + $0x20] sm:$0xff]   ;;  %v2249_v30 = vld [vmem:[%s2851_s23 + $0x18] sm:$0xff]   ;;  %v2251_v32 = vld [vmem:[%s2851_s23 + $0x8] sm:$0xff]  }
 0x44d   : > { %v1316_v22 = vcombine.high %v1315_v19, %v1315_v19  ;;  %v1331_v23 = vsel %vm1330_vm10, %v1881_v10, %v1315_v19  ;;  %v2252_v33 = vld [vmem:[%s2851_s23] sm:$0xff]   ;;  %v1883_v35 = vld [vmem:[%s2849_s9] ss:$0 sm:$0xff] }
 0x44e   : > { %1986 = vmatpush3.bf16.msra.mxu0 %v2233_v60  ;;  %2055 = vmatpush3.bf16.msra.mxu1 %v2246_v13  ;;  %v1334_v24 = vsel %vm1333_vm11, %v1331_v23, %v1327_v17  ;;  %v1906_v43 = vld [vmem:[%s2853_s13] ss:$0 sm:$0xff] }
 0x44f   : > { %1987 = vmatprep.subr.bf16.mxu0 %v2234_v61  ;;  %2056 = vmatprep.subr.bf16.mxu1 %v2533_v59  ;;  %v1332_v25 = vsel %vm1330_vm10, %v1304_v18, %v1316_v22  ;;  %v1904_v28 = vpack.c.bf16 %v1334_v24, %v1334_v24 }
 0x450   : > { %v1335_v27 = vsel %vm1333_vm11, %v1332_v25, %v1882_v5 }
 0x451   : > { %v1901_v29 = vpack.c.bf16 %v1335_v27, %v1335_v27 }
 0x452   : > { %1988 = vmatpush3.bf16.msra.mxu0 %v2235_v62  ;;  %2057 = vmatpush3.bf16.msra.mxu1 %v2247_v20 }
 0x453   : > { %1989 = vmatprep.subr.bf16.mxu0 %v2236_v63  ;;  %2058 = vmatprep.subr.bf16.mxu1 %v2533_v59 }
 0x454   : > { %1902 = vmatprep.mubr.msk.bf16.mxu0 %vm1900_vm13, %v1901_v29 }
 0x456   : > { %1990 = vmatpush3.bf16.msra.mxu0 %v2237_v0  ;;  %2059 = vmatpush3.bf16.msra.mxu1 %v2248_v26 }
 0x457   : > { %1991 = vmatprep.subr.bf16.mxu0 %v2238_v2  ;;  %2060 = vmatprep.subr.bf16.mxu1 %v2533_v59 }
 0x45a   : > { %1992 = vmatpush3.bf16.msra.mxu0 %v2239_v3  ;;  %2061 = vmatpush3.bf16.msra.mxu1 %v2249_v30 }
 0x45b   : > { %1993 = vmatprep.subr.bf16.mxu0 %v2240_v4  ;;  %2062 = vmatprep.subr.bf16.mxu1 %v2533_v59 }
 0x45e   : > { %1994 = vmatpush3.bf16.msra.mxu0 %v2241_v14  ;;  %2063 = vmatpush3.bf16.msra.mxu1 %v2250_v31 }
 0x45f   : > { %1995 = vmatprep.subr.bf16.mxu0 %v2242_v15  ;;  %2064 = vmatprep.subr.bf16.mxu1 %v2533_v59 }
 0x462   : > { %1996 = vmatpush3.bf16.msra.mxu0 %v2243_v21  ;;  %2065 = vmatpush3.bf16.msra.mxu1 %v2251_v32 }
 0x463   : > { %2066 = vmatprep.subr.bf16.mxu1 %v2533_v59 }
 0x465   : > { %1905 = vmatmul.mubr.msk.bf16.vlgmr.msra.gmra.mxu0 %vm1900_vm13, %v1904_v28 }
 0x466   : > { %2067 = vmatpush3.bf16.msra.mxu1 %v2252_v33 }
 0x525   : > { %v1997_v34 = vpop.f32.mrf.mxu0 }
 0x527   : > { %v1998_v36 = vpop.f32.mrf.mxu0 }
 0x528   : > { %v1999_v37 = vadd.f32 %v1998_v36, %v1997_v34 }
 0x529   : > { %v2000_v38 = vpop.f32.mrf.mxu0 }
 0x52a   : > { %v1511_v39 = vadd.f32 %v1999_v37, %v1883_v35 }
 0x52b   : > { %v2001_v40 = vpop.f32.mrf.mxu0 }
 0x52c   : > { %v1516_v41 = vmax.f32 %v1511_v39, 0.0 }
 0x52e   : > { %v1517_v42 = vpack.c.bf16 %v1516_v41, %v1516_v41 }
 0x530   : > { %2069 = vmatmul.mubr.bf16.vlgmr.msra.gmra.mxu1 %v1517_v42 }
 0x5f0   : > { %v1623_v44 = vpop.f32.mrf.mxu1 }
 0x5f1   : > { %v1624_v45 = vadd.f32 %v1906_v43, %v1623_v44 }
 0x5f2   : > { %v2070_v46 = vpop.f32.mrf.mxu1 }
 0x5f3   : > { %1629 = vst [vmem:[%s2847_s0] sm:$0xff] %v1624_v45 }
 0x5f4   : > { %v1626_v47 = vpop.f32.mrf.mxu1 }
 0x5f6   : > { %v2071_v48 = vpop.f32.mrf.mxu1 }
 0x5f7 PF: > { %s3069_s28 = sld [smem:[#allocation18_spill]]  ;;  %s3072_s25 = smov %s2507_s26 }
 0x5f8   : > { %s3070_s5 = sld [smem:[#allocation17_spill]] }
 0x5f9   : > { %s3071_s27 = sld [smem:[#allocation19_spill]] }
 0x5fd   : > { %p23_p9 = scmp.ge.s32.totalorder %s3069_s28, 5  }
 0x5fe   : > { %s3073_s26 = smov %s3070_s5 }
 0x5ff   :  { %25 = sbr.rel (!%p23_p9) target bundleno = 13 (0xd), region = 172 }
 0x604   :  { %1649 = vsyncpa [#allocation3], 1 }
 0x605   :  { %1651 = vsyncpa [#allocation3 + $0x1], 1 }
 0x606   :  { %1652 = vsyncpa [#allocation5], 1 }
 0x607   :  { %1653 = vsyncpa [#allocation8], 1 }

</bundles_post_ra>
